<compile_context>
chip_gen: v5e
topology: v5e:2x2
jax: 0.10.0
libtpu: 0.0.40
codegen_flags: <defaults>
</compile_context>

<pallas_src>
import functools

import numpy as np
import jax
import jax.numpy as jnp
from jax import lax
from jax.experimental import pallas as pl
from jax.experimental.pallas import tpu as pltpu

# ---------------- synthetic, deterministic "spec_config" -------------------
SAMPLE_RATE = 16000
N_FFT = 128
HOP_LENGTH = 64            # N_FFT == 2 * HOP_LENGTH (used for gather-free framing)
WIN_LENGTH = 128
N_MELS = 32
FREQ_PAD = 128             # n_fft//2 + 1 = 65 padded up to 128 (lane aligned)
LOG_CLAMP = 1e-5
MAG_EPS = 1e-9
MAX_FRAME_TILE = 1024      # frames per grid step (multiple of 128: lane-dense tgt,
                           # 16-row bf16 sublane packing of the frames block)


def _hann_window_periodic(n):
    i = np.arange(n)
    return 0.5 - 0.5 * np.cos(2.0 * np.pi * i / n)


def _dft_fused_basis(n_fft, freq_pad):
    """Window-folded real-DFT bases, cos||sin fused along lanes, zero padded."""
    n_freq = n_fft // 2 + 1
    n = np.arange(n_fft)[:, None]
    k = np.arange(n_freq)[None, :]
    ang = 2.0 * np.pi * n * k / n_fft
    win = _hann_window_periodic(n_fft)[:, None]
    basis = np.zeros((n_fft, 2 * freq_pad), np.float32)
    basis[:, :n_freq] = (win * np.cos(ang)).astype(np.float32)
    basis[:, freq_pad:freq_pad + n_freq] = (win * np.sin(ang)).astype(np.float32)
    return basis


def _hz_to_mel(f):
    return 2595.0 * np.log10(1.0 + f / 700.0)


def _mel_to_hz(m):
    return 700.0 * (10.0 ** (m / 2595.0) - 1.0)


def _mel_filterbank(sr, n_fft, n_mels, freq_pad):
    """HTK triangular mel filterbank, zero padded on the freq axis."""
    n_freq = n_fft // 2 + 1
    freqs = np.linspace(0.0, sr / 2.0, n_freq)
    mel_pts = np.linspace(_hz_to_mel(0.0), _hz_to_mel(sr / 2.0), n_mels + 2)
    hz_pts = _mel_to_hz(mel_pts)
    fb = np.zeros((freq_pad, n_mels), np.float32)
    for m in range(n_mels):
        lo, ctr, hi = hz_pts[m], hz_pts[m + 1], hz_pts[m + 2]
        up = (freqs - lo) / max(ctr - lo, 1e-8)
        down = (hi - freqs) / max(hi - ctr, 1e-8)
        fb[:n_freq, m] = np.maximum(0.0, np.minimum(up, down)).astype(np.float32)
    return fb


# Module-level constants (hoisted out of the wrapper per review).
_DFT_BASIS_NP = _dft_fused_basis(N_FFT, FREQ_PAD)                   # (128, 256) f32
_MEL_FB_NP = _mel_filterbank(SAMPLE_RATE, N_FFT, N_MELS, FREQ_PAD)  # (128, 32)  f32


def _use_bf16_sqrt():
    """bf16 EUP exists on v6e/v7x; keep f32 sqrt on older chips (v5e etc.)."""
    try:
        kind = jax.devices()[0].device_kind.lower()
    except Exception:
        return False
    return ("v6" in kind) or ("v7" in kind)


# ------------------------------- kernel ------------------------------------
def _mel_l1_kernel(frames_ref, dftb_ref, fb_ref, tgt_ref, out_ref, *,
                   tf, n_frames, freq_pad, bf16_sqrt):
    """One (batch, frame-tile) step.

    Fused DFT matmul -> magnitude -> mel matmul -> log -> |target - logmel|
    -> scalar partial sum, written as a dense 128-lane row (no masked stores).
    No cross-step carry, so both grid axes stay fully parallel.
    """
    f = pl.program_id(1)

    frames = frames_ref[0]                                    # (TF, N_FFT) bf16
    # Single fused DFT matmul: lanes [0:128) are cos, [128:256) are sin.
    dft = jnp.dot(frames, dftb_ref[...],
                  preferred_element_type=jnp.float32)         # (TF, 2*FREQ_PAD) f32
    re = dft[:, :freq_pad]
    im = dft[:, freq_pad:]
    power = re * re + im * im + MAG_EPS                       # f32 (TF, FREQ_PAD)
    if bf16_sqrt:
        mag = jnp.sqrt(power.astype(jnp.bfloat16))            # bf16 EUP (v6e/v7x)
    else:
        mag = jnp.sqrt(power).astype(jnp.bfloat16)            # f32 EUP (v5e path)

    mel = jnp.dot(mag, fb_ref[...],
                  preferred_element_type=jnp.float32)         # (TF, N_MELS) f32
    logmel = jnp.log(jnp.maximum(mel, LOG_CLAMP))

    # Target block is in native (N_MELS, TF) layout; transpose the small log-mel
    # tile on the XLU instead of transposing the target array in HBM.
    diff = jnp.abs(tgt_ref[0] - logmel.T)                     # (N_MELS, TF) f32

    if n_frames % tf != 0:
        # Boundary tile: mask out frame columns beyond the true frame count
        # (out-of-bounds block contents are garbage but never contaminate valid
        # columns — all matmuls are independent along the frame axis).
        col = f * tf + lax.broadcasted_iota(jnp.int32, diff.shape, 1)
        diff = jnp.where(col < n_frames, diff, 0.0)

    out_ref[...] = jnp.broadcast_to(jnp.sum(diff), (1, 1, 128))


# ------------------------------- wrapper ------------------------------------
@jax.jit
def mel_l1_loss(mel_spectrogram, predicted_audios):
    B = predicted_audios.shape[0]
    audio = predicted_audios[:, 0, :]                              # squeeze(1) -> (B, T)
    T = audio.shape[1]
    pad = N_FFT // 2
    x = jnp.pad(audio, ((0, 0), (pad, pad)), mode="reflect")       # center=True

    if (T + 2 * pad) % HOP_LENGTH == 0:
        # Gather-free framing: N_FFT == 2*HOP, so frame t = blocks[t] ++ blocks[t+1].
        # Under jit this fuses with the pad + bf16 cast into one HBM pass.
        n_blocks = (T + 2 * pad) // HOP_LENGTH
        F = n_blocks - 1
        blocks = x.reshape(B, n_blocks, HOP_LENGTH)
        frames = jnp.concatenate([blocks[:, :-1, :], blocks[:, 1:, :]], axis=-1)
    else:
        # TODO(synk): slow-path gather for audio lengths not divisible by HOP_LENGTH.
        F = 1 + (T + 2 * pad - N_FFT) // HOP_LENGTH
        idx = np.arange(F)[:, None] * HOP_LENGTH + np.arange(N_FFT)[None, :]
        frames = x[:, idx]
    frames = frames.astype(jnp.bfloat16)                           # (B, F, N_FFT)

    tgt = mel_spectrogram.astype(jnp.float32)                      # (B, N_MELS, F) native

    # Frame tile: whole F when it fits (the "full-dim" BlockSpec clause covers
    # non-aligned F), else 1024-frame tiles with a masked boundary block.
    # Per-step VMEM at TF=1024: 2x(256 KiB frames + 128 KiB target) + ~1.5 MiB
    # f32 intermediates + ~80 KiB constants — well inside every chip's default.
    TF = F if F <= MAX_FRAME_TILE else MAX_FRAME_TILE
    nf = (F + TF - 1) // TF

    dft_basis = jnp.asarray(_DFT_BASIS_NP, dtype=jnp.bfloat16)     # (128, 256)
    fb = jnp.asarray(_MEL_FB_NP, dtype=jnp.bfloat16)               # (128, 32)

    kernel = functools.partial(_mel_l1_kernel, tf=TF, n_frames=F,
                               freq_pad=FREQ_PAD, bf16_sqrt=_use_bf16_sqrt())

    partials = pl.pallas_call(
        kernel,
        out_shape=jax.ShapeDtypeStruct((B * nf, 1, 128), jnp.float32),
        grid_spec=pltpu.PrefetchScalarGridSpec(
            num_scalar_prefetch=0,
            grid=(B, nf),
            in_specs=[
                pl.BlockSpec((1, TF, N_FFT), lambda b, f: (b, f, 0)),
                pl.BlockSpec((N_FFT, 2 * FREQ_PAD), lambda b, f: (0, 0)),
                pl.BlockSpec((FREQ_PAD, N_MELS), lambda b, f: (0, 0)),
                pl.BlockSpec((1, N_MELS, TF), lambda b, f: (b, 0, f)),
            ],
            out_specs=pl.BlockSpec((1, 1, 128), lambda b, f: (b * nf + f, 0, 0)),
        ),
        compiler_params=pltpu.CompilerParams(
            dimension_semantics=("parallel", "parallel")),  # no cross-step carry
    )(frames, dft_basis, fb, tgt)

    return jnp.sum(partials[:, 0, 0]) / jnp.float32(B * F * N_MELS)


# --------------------------- pure-JAX reference ------------------------------
def _ref_mel_l1_loss(mel_spectrogram, predicted_audios):
    audio = jnp.squeeze(predicted_audios, axis=1)
    pad = N_FFT // 2
    x = jnp.pad(audio, ((0, 0), (pad, pad)), mode="reflect")
    n_frames = 1 + (x.shape[1] - N_FFT) // HOP_LENGTH
    idx = np.arange(n_frames)[:, None] * HOP_LENGTH + np.arange(N_FFT)[None, :]
    frames = x[:, idx].astype(jnp.float32)
    cos_b, sin_b = _DFT_BASIS_NP[:, :FREQ_PAD], _DFT_BASIS_NP[:, FREQ_PAD:]
    re = jnp.einsum("bfn,nk->bfk", frames, cos_b)
    im = jnp.einsum("bfn,nk->bfk", frames, sin_b)
    mag = jnp.sqrt(re * re + im * im + MAG_EPS)
    mel = jnp.einsum("bfk,km->bfm", mag, _MEL_FB_NP)
    logmel = jnp.log(jnp.maximum(mel, LOG_CLAMP))
    pred = jnp.transpose(logmel, (0, 2, 1))                        # (B, n_mels, F)
    return jnp.mean(jnp.abs(mel_spectrogram - pred))


if __name__ == "__main__":
    key = jax.random.PRNGKey(0)
    k1, k2 = jax.random.split(key)

    B, T = 2, 512
    n_frames = T // HOP_LENGTH + 1                                 # center=True -> 9

    predicted_audios = 0.1 * jax.random.normal(k1, (B, 1, T), dtype=jnp.float32)
    mel_spectrogram = jax.random.normal(k2, (B, N_MELS, n_frames), dtype=jnp.float32) - 3.0

    loss = mel_l1_loss(mel_spectrogram, predicted_audios)
    loss = jax.block_until_ready(loss)

    ref = jax.block_until_ready(_ref_mel_l1_loss(mel_spectrogram, predicted_audios))
    np.testing.assert_allclose(float(loss), float(ref), rtol=5e-2, atol=5e-3)

    print("KERNEL_OK")
</pallas_src>

<mosaic_0001>
module attributes {stable_mosaic.version = 11 : i64} {
  func.func @_mel_l1_kernel(%arg0: i32, %arg1: i32, %arg2: memref<1x9x128xbf16, #tpu.memory_space<vmem>>, %arg3: memref<128x256xbf16, #tpu.memory_space<vmem>>, %arg4: memref<128x32xbf16, #tpu.memory_space<vmem>>, %arg5: memref<1x32x9xf32, #tpu.memory_space<vmem>>, %arg6: memref<1x1x128xf32, #tpu.memory_space<vmem>>) attributes {dimension_semantics = [#tpu.dimension_semantics<parallel>, #tpu.dimension_semantics<parallel>], iteration_bounds = array<i64: 2, 1>, scalar_prefetch = 0 : i64, scratch_operands = 0 : i64, tpu.core_type = #tpu.core_type<tc>, window_params = [{transform_indices = @transform_0, window_bounds = array<i64: 1, 9, 128>}, {pipeline_mode = #tpu.pipeline_mode<synchronous>, transform_indices = @transform_1, window_bounds = array<i64: 128, 256>}, {pipeline_mode = #tpu.pipeline_mode<synchronous>, transform_indices = @transform_2, window_bounds = array<i64: 128, 32>}, {transform_indices = @transform_3, window_bounds = array<i64: 1, 32, 9>}, {transform_indices = @transform_4, window_bounds = array<i64: 1, 1, 128>}]} {
    %c0 = arith.constant 0 : index
    %c0_0 = arith.constant 0 : index
    %c0_1 = arith.constant 0 : index
    %0 = vector.load %arg2[%c0, %c0_0, %c0_1] : memref<1x9x128xbf16, #tpu.memory_space<vmem>>, vector<1x9x128xbf16>
    %1 = vector.shape_cast %0 : vector<1x9x128xbf16> to vector<9x128xbf16>
    %c0_2 = arith.constant 0 : index
    %c0_3 = arith.constant 0 : index
    %2 = vector.load %arg3[%c0_2, %c0_3] : memref<128x256xbf16, #tpu.memory_space<vmem>>, vector<128x256xbf16>
    %cst = arith.constant dense<0.000000e+00> : vector<9x256xf32>
    %3 = tpu.matmul %1, %2, %cst {dimension_numbers = #tpu.dot_dimension_numbers<[1], [0], [0], [1], [0, 0, 1, 1], [], []>} : vector<9x128xbf16>, vector<128x256xbf16>, vector<9x256xf32> -> vector<9x256xf32>
    %4 = vector.extract_strided_slice %3 {offsets = [0, 0], sizes = [9, 128], strides = [1, 1]} : vector<9x256xf32> to vector<9x128xf32>
    %5 = vector.extract_strided_slice %3 {offsets = [0, 128], sizes = [9, 128], strides = [1, 1]} : vector<9x256xf32> to vector<9x128xf32>
    %6 = arith.mulf %4, %4 : vector<9x128xf32>
    %7 = arith.mulf %5, %5 : vector<9x128xf32>
    %8 = arith.addf %6, %7 : vector<9x128xf32>
    %cst_4 = arith.constant 9.99999971E-10 : f32
    %9 = vector.broadcast %cst_4 : f32 to vector<9x128xf32>
    %10 = arith.addf %8, %9 : vector<9x128xf32>
    %11 = math.sqrt %10 : vector<9x128xf32>
    %12 = arith.truncf %11 : vector<9x128xf32> to vector<9x128xbf16>
    %c0_5 = arith.constant 0 : index
    %c0_6 = arith.constant 0 : index
    %13 = vector.load %arg4[%c0_5, %c0_6] : memref<128x32xbf16, #tpu.memory_space<vmem>>, vector<128x32xbf16>
    %cst_7 = arith.constant dense<0.000000e+00> : vector<9x32xf32>
    %14 = tpu.matmul %12, %13, %cst_7 {dimension_numbers = #tpu.dot_dimension_numbers<[1], [0], [0], [1], [0, 0, 1, 1], [], []>} : vector<9x128xbf16>, vector<128x32xbf16>, vector<9x32xf32> -> vector<9x32xf32>
    %cst_8 = arith.constant 9.99999974E-6 : f32
    %15 = vector.broadcast %cst_8 : f32 to vector<9x32xf32>
    %16 = arith.maximumf %14, %15 : vector<9x32xf32>
    %17 = math.log %16 : vector<9x32xf32>
    %c0_9 = arith.constant 0 : index
    %c0_10 = arith.constant 0 : index
    %c0_11 = arith.constant 0 : index
    %18 = vector.load %arg5[%c0_9, %c0_10, %c0_11] : memref<1x32x9xf32, #tpu.memory_space<vmem>>, vector<1x32x9xf32>
    %19 = vector.shape_cast %18 : vector<1x32x9xf32> to vector<32x9xf32>
    %20 = tpu.transpose %17, [1, 0] : vector<9x32xf32> -> vector<32x9xf32>
    %21 = arith.subf %19, %20 : vector<32x9xf32>
    %22 = math.absf %21 : vector<32x9xf32>
    %23 = vector.shape_cast %22 : vector<32x9xf32> to vector<1x32x9xf32>
    %cst_12 = arith.constant dense<0.000000e+00> : vector<1xf32>
    %24 = vector.multi_reduction <add>, %23, %cst_12 [1, 2] : vector<1x32x9xf32> to vector<1xf32>
    %25 = vector.shape_cast %24 : vector<1xf32> to vector<1x1x1xf32>
    %26 = vector.extract %25[0, 0, 0] : f32 from vector<1x1x1xf32>
    %27 = vector.broadcast %26 : f32 to vector<1x1x128xf32>
    %c0_13 = arith.constant 0 : index
    %c0_14 = arith.constant 0 : index
    %c0_15 = arith.constant 0 : index
    %28 = vector.load %arg6[%c0_13, %c0_14, %c0_15] : memref<1x1x128xf32, #tpu.memory_space<vmem>>, vector<1x1x128xf32>
    tpu.vector_store %arg6[%c0_13, %c0_14, %c0_15], %27 {strides = array<i32>} : memref<1x1x128xf32, #tpu.memory_space<vmem>>, vector<1x1x128xf32>,
    return
  }
  func.func @transform_0(%arg0: i32, %arg1: i32) -> (i32, i32, i32) {
    %c0_i32 = arith.constant 0 : i32
    %c0_i32_0 = arith.constant 0 : i32
    return %arg0, %arg1, %c0_i32 : i32, i32, i32
  }
  func.func @transform_1(%arg0: i32, %arg1: i32) -> (i32, i32) {
    %c0_i32 = arith.constant 0 : i32
    %c0_i32_0 = arith.constant 0 : i32
    %c0_i32_1 = arith.constant 0 : i32
    return %c0_i32, %c0_i32_0 : i32, i32
  }
  func.func @transform_2(%arg0: i32, %arg1: i32) -> (i32, i32) {
    %c0_i32 = arith.constant 0 : i32
    %c0_i32_0 = arith.constant 0 : i32
    %c0_i32_1 = arith.constant 0 : i32
    return %c0_i32, %c0_i32_0 : i32, i32
  }
  func.func @transform_3(%arg0: i32, %arg1: i32) -> (i32, i32, i32) {
    %c0_i32 = arith.constant 0 : i32
    %c0_i32_0 = arith.constant 0 : i32
    return %arg0, %c0_i32, %arg1 : i32, i32, i32
  }
  func.func @transform_4(%arg0: i32, %arg1: i32) -> (i32, i32, i32) {
    %c1_i32 = arith.constant 1 : i32
    %0 = arith.muli %arg0, %c1_i32 : i32
    %1 = arith.addi %0, %arg1 : i32
    %c0_i32 = arith.constant 0 : i32
    %c0_i32_0 = arith.constant 0 : i32
    %c0_i32_1 = arith.constant 0 : i32
    return %1, %c0_i32, %c0_i32_0 : i32, i32, i32
  }
}

</mosaic_0001>

<bundles_post_ra>
// kernel: mel_l1_loss.1
= control target key start
LH: loop header
LB: loop body
LE: loop exit
PB: predicated region body
PF: predicated region fallthrough
CT: control target
= control target key end

     0   :  { %s875_s15 = smov 0   ;;  %s877_s16 = smov 0   ;;  %s1040_s0 = inlined_call_operand.vmem [shape: bf16[2,9,128], index: 0, kind: input, shape index: {}]   ;;  %s1041_s1 = inlined_call_operand.vmem [shape: bf16[128,256], index: 1, kind: input, shape index: {}]   ;;  %s1042_s2 = inlined_call_operand.vmem [shape: bf16[128,32], index: 2, kind: input, shape index: {}]   ;;  %s1043_s3 = inlined_call_operand.vmem [shape: f32[2,32,9], index: 3, kind: input, shape index: {}]   ;;  %s1044_s4 = inlined_call_operand.vmem [shape: f32[2,1,128], index: 4, kind: output, shape index: {}]  }
   0x1   :  { %s879_s17 = smov 0  }
   0x2 LB: > { %s26_s18 = sadd.s32 1, %s844_s16  ;;  %p657_p0 = scmp.ge.s32.totalorder %s848_s17, 1  ;;  %s848_s17 = sphi %s879_s17, %s14_s17   ;;  %s844_s16 = sphi %s877_s16, %s1046_s16   ;;  %s840_s15 = sphi %s875_s15, %s1045_s15  }
   0x3   : > { %p28_p1 = scmp.ge.s32.totalorder %s26_s18, 2  ;;  %p198_p2 = scmp.lt.s32.totalorder %s848_s17, 3 }
   0x5   : > { %s1048_s18 = smov (%p28_p1, %s26_s18), 0  ;;  %p199_p3 = pnand %p657_p0, %p198_p2 }
   0x6   : > { %p236_p4 = scmp.lt.s32.totalorder (!%p199_p3), %s840_s15, 1 }
   0x7   : > { %202 = sbr.rel (%p199_p3) target bundleno = 729 (0x2d9), region = 36 }
   0xc   : > { %v724_v0 = vld [vmem:[%s1041_s1 + $0x70] sm:$0xf]  ;;  %v782_v1 = vld [vmem:[%s1041_s1 + $0x74] sm:$0xf0]  ;;  %v781_v2 = vld [vmem:[%s1041_s1 + $0x74] sm:$0xf] }
   0xd   : > { %v725_v3 = vor.u32 %v782_v1, %v724_v0  ;;  %v726_v4 = vld [vmem:[%s1041_s1 + $0x78] sm:$0xf0]  ;;  %v716_v5 = vld [vmem:[%s1041_s1 + $0x60] sm:$0xf]  ;;  %v780_v6 = vld [vmem:[%s1041_s1 + $0x64] sm:$0xf0] }
   0xe   : > { %v729_v7 = vor.u32 %v781_v2, %v726_v4  ;;  %v779_v8 = vld [vmem:[%s1041_s1 + $0x64] sm:$0xf]  ;;  %v718_v9 = vld [vmem:[%s1041_s1 + $0x68] sm:$0xf0]  ;;  %v717_v10 = vor.u32 %v780_v6, %v716_v5  ;;  %v708_v12 = vld [vmem:[%s1041_s1 + $0x50] sm:$0xf] }
   0xf   : > { %362 = vmatpush.bf16.msra.mxu0 %v725_v3  ;;  %v721_v11 = vor.u32 %v779_v8, %v718_v9  ;;  %v778_v13 = vld [vmem:[%s1041_s1 + $0x54] sm:$0xf0]  ;;  %v777_v14 = vld [vmem:[%s1041_s1 + $0x54] sm:$0xf]  ;;  %v710_v15 = vld [vmem:[%s1041_s1 + $0x58] sm:$0xf0] }
  0x10   : > { %376 = vmatpush.bf16.msra.mxu1 %v729_v7  ;;  %v709_v16 = vor.u32 %v778_v13, %v708_v12  ;;  %v713_v17 = vor.u32 %v777_v14, %v710_v15  ;;  %v700_v18 = vld [vmem:[%s1041_s1 + $0x40] sm:$0xf]  ;;  %v776_v19 = vld [vmem:[%s1041_s1 + $0x44] sm:$0xf0]  ;;  %v775_v20 = vld [vmem:[%s1041_s1 + $0x44] sm:$0xf] }
  0x11   : > { %v702_v21 = vld [vmem:[%s1041_s1 + $0x48] sm:$0xf0]  ;;  %v701_v22 = vor.u32 %v776_v19, %v700_v18  ;;  %v692_v24 = vld [vmem:[%s1041_s1 + $0x30] sm:$0xf]  ;;  %v774_v25 = vld [vmem:[%s1041_s1 + $0x34] sm:$0xf0] }
  0x12   : > { %v705_v23 = vor.u32 %v775_v20, %v702_v21  ;;  %v773_v26 = vld [vmem:[%s1041_s1 + $0x34] sm:$0xf]  ;;  %v694_v27 = vld [vmem:[%s1041_s1 + $0x38] sm:$0xf0]  ;;  %v693_v28 = vor.u32 %v774_v25, %v692_v24  ;;  %v684_v30 = vld [vmem:[%s1041_s1 + $0x20] sm:$0xf] }
  0x13   : > { %363 = vmatpush.bf16.msra.mxu0 %v717_v10  ;;  %v697_v29 = vor.u32 %v773_v26, %v694_v27  ;;  %v772_v31 = vld [vmem:[%s1041_s1 + $0x24] sm:$0xf0]  ;;  %v771_v32 = vld [vmem:[%s1041_s1 + $0x24] sm:$0xf]  ;;  %v686_v33 = vld [vmem:[%s1041_s1 + $0x28] sm:$0xf0] }
  0x14   : > { %377 = vmatpush.bf16.msra.mxu1 %v721_v11  ;;  %s1050_s15 = smov (!%p236_p4, %s840_s15), 1  ;;  %v685_v34 = vor.u32 %v772_v31, %v684_v30  ;;  %v689_v35 = vor.u32 %v771_v32, %v686_v33  ;;  %v676_v36 = vld [vmem:[%s1041_s1 + $0x10] sm:$0xf]  ;;  %v770_v37 = vld [vmem:[%s1041_s1 + $0x14] sm:$0xf0]  ;;  %v788_v53 = vld [vmem:[%s1042_s2 + $0x28] sm:$0xff] }
  0x15   : > { %v769_v38 = vld [vmem:[%s1041_s1 + $0x14] sm:$0xf]  ;;  %v678_v39 = vld [vmem:[%s1041_s1 + $0x18] sm:$0xf0]  ;;  %s764_s5 = sshll.u32 %s1050_s15, 3  ;;  %v677_v40 = vor.u32 %v770_v37, %v676_v36  ;;  %v787_v54 = vld [vmem:[%s1042_s2 + $0x20] sm:$0xff]  ;;  %s256_s21 = scalar_lea.vmem %s1044_s4, %s1050_s15 }
  0x16   : > { %v681_v41 = vor.u32 %v769_v38, %v678_v39  ;;  %v668_v42 = vld [vmem:[%s1041_s1] sm:$0xf]  ;;  %v768_v43 = vld [vmem:[%s1041_s1 + $0x4] sm:$0xf0]  ;;  %s243_s12 = scalar_lea.vmem %s1040_s0, %s764_s5  ;;  %v767_v44 = vld [vmem:[%s1041_s1 + $0x4] sm:$0xf] }
  0x17   : > { %364 = vmatpush.bf16.msra.mxu0 %v709_v16  ;;  %v670_v45 = vld [vmem:[%s1041_s1 + $0x8] sm:$0xf0]  ;;  %v669_v46 = vor.u32 %v768_v43, %v668_v42  ;;  %v664_v47 = vld [vmem:[%s243_s12] sm:$0xf]  ;;  %v766_v48 = vld [vmem:[%s243_s12] sm:$0x10] }
  0x18   : > { %378 = vmatpush.bf16.msra.mxu1 %v713_v17  ;;  %v673_v49 = vor.u32 %v767_v44, %v670_v45  ;;  %v665_v50 = vor.u32 %v766_v48, %v664_v47  ;;  %v790_v51 = vld [vmem:[%s1042_s2 + $0x38] sm:$0xff]  ;;  %v789_v52 = vld [vmem:[%s1042_s2 + $0x30] sm:$0xff]  ;;  %v784_v57 = vld [vmem:[%s1042_s2 + $0x8] sm:$0xff]  ;;  %s765_s11 = sshll.u32 %s1050_s15, 5  ;;  %vm551_vm4 = vcmask 72704  }
  0x19   : > { %487 = vmatpush.bf16.msra.mxu2 %v790_v51  ;;  %v786_v55 = vld [vmem:[%s1042_s2 + $0x18] sm:$0xff]  ;;  %v785_v56 = vld [vmem:[%s1042_s2 + $0x10] sm:$0xff]  ;;  %v783_v59 = vld [vmem:[%s1042_s2] sm:$0xff]  ;;  %s252_s14 = scalar_lea.vmem %s1043_s3, %s765_s11 }
  0x1a   : > { %v508_v38 = vld [vmem:[%s252_s14 + $0x8] sm:$0xff]  ;;  %v507_v39 = vld [vmem:[%s252_s14] sm:$0xff]  ;;  %v510_v48 = vld [vmem:[%s252_s14 + $0x18] sm:$0xff] }
  0x1b   : > { %365 = vmatpush.bf16.msra.mxu0 %v701_v22 }
  0x1c   : > { %379 = vmatpush.bf16.msra.mxu1 %v705_v23 }
  0x1d   : > { %488 = vmatpush.bf16.msra.mxu2 %v789_v52 }
  0x1f   : > { %366 = vmatpush.bf16.msra.mxu0 %v693_v28 }
  0x20   : > { %380 = vmatpush.bf16.msra.mxu1 %v697_v29 }
  0x21   : > { %489 = vmatpush.bf16.msra.mxu2 %v788_v53 }
  0x23   : > { %367 = vmatpush.bf16.msra.mxu0 %v685_v34 }
  0x24   : > { %381 = vmatpush.bf16.msra.mxu1 %v689_v35 }
  0x25   : > { %490 = vmatpush.bf16.msra.mxu2 %v787_v54 }
  0x27   : > { %368 = vmatpush.bf16.msra.mxu0 %v677_v40  ;;  %v509_v40 = vld [vmem:[%s252_s14 + $0x10] sm:$0xff] }
  0x28   : > { %382 = vmatpush.bf16.msra.mxu1 %v681_v41 }
  0x29   : > { %491 = vmatpush.bf16.msra.mxu2 %v786_v55 }
  0x2b   : > { %369 = vmatpush.bf16.msra.mxu0 %v669_v46 }
  0x2c   : > { %383 = vmatpush.bf16.msra.mxu1 %v673_v49 }
  0x2d   : > { %492 = vmatpush.bf16.msra.mxu2 %v785_v56 }
  0x2e   : > { %370 = vmatmul.bf16.vlgmr.msra.gmra.mxu0 %v665_v50 }
  0x2f   : > { %384 = vmatmul.bf16.vlgmr.msra.gmra.mxu1 %v665_v50 }
  0x31   : > { %493 = vmatpush.bf16.msra.mxu2 %v784_v57 }
  0x35   : > { %494 = vmatpush.bf16.msra.mxu2 %v783_v59 }
  0xab   : > { %v371_v58 = vpop.f32.mrf.mxu0 }
  0xac   : > { %v390_v60 = vmul.f32 %v371_v58, %v371_v58  ;;  %v385_v61 = vpop.f32.mrf.mxu1 }
  0xad   : > { %v392_v62 = vmul.f32 %v385_v61, %v385_v61 }
  0xaf   : > { %v394_v63 = vadd.f32 %v392_v62, %v390_v60 }
  0xb1   : > { %v396_v0 = vadd.f32 1e-09, %v394_v63 }
  0xb3   : > { %v373_v1 = vpop.f32.mrf.mxu0  ;;  %818 = vrsqrt.f32 %v396_v0  ;;  %vm405_vm0 = vcmp.eq.f32.partialorder %v396_v0, inf  ;;  %v408_v22 = vand.u32 2147483648, %v396_v0  ;;  %vm407_vm2 = vcmp.eq.f32.partialorder %v396_v0, 0.0 }
  0xb4   : > { %v391_v2 = vmul.f32 %v373_v1, %v373_v1  ;;  %v387_v3 = vpop.f32.mrf.mxu1 }
  0xb5   : > { %v393_v4 = vmul.f32 %v387_v3, %v387_v3 }
  0xb7   : > { %v395_v5 = vadd.f32 %v393_v4, %v391_v2 }
  0xb9   : > { %v819_v6 = vpop.eup %818  ;;  %v397_v7 = vadd.f32 1e-09, %v395_v5 }
  0xba   : > { %v399_v8 = vmul.f32 %v819_v6, %v396_v0 }
  0xbb   : > { %820 = vrsqrt.f32 %v397_v7  ;;  %vm417_vm1 = vcmp.eq.f32.partialorder %v397_v7, inf  ;;  %v420_v23 = vand.u32 2147483648, %v397_v7  ;;  %vm419_vm3 = vcmp.eq.f32.partialorder %v397_v7, 0.0 }
  0xbc   : > { %v400_v9 = vmul.f32 %v819_v6, %v399_v8 }
  0xbe   : > { %v401_v10 = vmul.f32 0.5, %v400_v9 }
  0xc0   : > { %v402_v11 = vsub.f32 1.5, %v401_v10 }
  0xc1   : > { %v821_v12 = vpop.eup %820 }
  0xc2   : > { %v411_v13 = vmul.f32 %v821_v12, %v397_v7  ;;  %v403_v14 = vmul.f32 %v819_v6, %v402_v11 }
  0xc4   : > { %v412_v15 = vmul.f32 %v821_v12, %v411_v13  ;;  %v404_v17 = vmul.f32 %v403_v14, %v396_v0 }
  0xc6   : > { %v413_v16 = vmul.f32 0.5, %v412_v15  ;;  %v406_v20 = vsel %vm405_vm0, %v396_v0, %v404_v17 }
  0xc7   : > { %v409_v25 = vsel %vm407_vm2, %v408_v22, %v406_v20 }
  0xc8   : > { %v414_v18 = vsub.f32 1.5, %v413_v16 }
  0xca   : > { %v415_v19 = vmul.f32 %v821_v12, %v414_v18 }
  0xcc   : > { %v416_v21 = vmul.f32 %v415_v19, %v397_v7 }
  0xce   : > { %v418_v24 = vsel %vm417_vm1, %v397_v7, %v416_v21 }
  0xcf   : > { %v421_v26 = vsel %vm419_vm3, %v420_v23, %v418_v24 }
  0xd0   : > { %v422_v27 = vpack.c.bf16 %v421_v26, %v409_v25 }
  0xd2   : > { %495 = vmatmul.bf16.vlgmr.msra.gmra.mxu2 %v422_v27 }
 0x155   : > { %v496_v28 = vpop.f32.mrf.mxu2 }
 0x156   : > { %v501_v29 = vmax.f32 %v496_v28, 1e-05 }
 0x158   : > { %822 = vlog2.f32 %v501_v29 }
 0x15d   : > { %v498_v30 = vpop.f32.mrf.mxu2 }
 0x15e   : > { %v823_v31 = vpop.eup %822  ;;  %v502_v32 = vmax.f32 %v498_v30, 1e-05 }
 0x15f   : > { %v504_v33 = vmul.f32 0.6931472, %v823_v31 }
 0x160   : > { %824 = vlog2.f32 %v502_v32 }
 0x161   : > { %511 = vxpose.xlu0.b32.start [1/2] (short) (narrow) %v504_v33, 32 }
 0x166   : > { %v825_v34 = vpop.eup %824 }
 0x167   : > { %v506_v35 = vmul.f32 0.6931472, %v825_v34 }
 0x169   : > { %512 = vxpose.xlu0.b32.end [2/2] (short) (narrow) %v506_v35, 32 }
 0x205   : > { %v527_v36 = vpop.trf.xlu0 }
 0x206   : > { %v543_v43 = vsub.f32 %v507_v39, %v527_v36 }
 0x208   : > { %v547_v46 = vand.u32 2147483647, %v543_v43 }
 0x20a   : > { %v552_v51 = vsel %vm551_vm4, %v547_v46, 0.0 }
 0x20d   : > { %v528_v37 = vpop.trf.xlu0 }
 0x20e   : > { %v544_v41 = vsub.f32 %v508_v38, %v528_v37 }
 0x210   : > { %v548_v45 = vand.u32 2147483647, %v544_v41 }
 0x212   : > { %v553_v49 = vsel %vm551_vm4, %v548_v45, 0.0 }
 0x213   : > { %v554_v54 = vadd.f32 %v553_v49, %v552_v51 }
 0x215   : > { %v529_v42 = vpop.trf.xlu0 }
 0x216   : > { %v545_v44 = vsub.f32 %v509_v40, %v529_v42 }
 0x218   : > { %v549_v47 = vand.u32 2147483647, %v545_v44 }
 0x21a   : > { %v555_v53 = vsel %vm551_vm4, %v549_v47, 0.0 }
 0x21b   : > { %v556_v56 = vadd.f32 %v555_v53, %v554_v54 }
 0x21d   : > { %v530_v50 = vpop.trf.xlu0 }
 0x21e   : > { %v546_v52 = vsub.f32 %v510_v48, %v530_v50 }
 0x220   : > { %v550_v55 = vand.u32 2147483647, %v546_v52 }
 0x222   : > { %v557_v57 = vsel %vm551_vm4, %v550_v55, 0.0 }
 0x223   : > { %v558_v58 = vadd.f32 %v557_v57, %v556_v56 }
 0x225   : > { %559 = vadd.xlane.f32.xlu1 %v558_v58 }
 0x298   : > { %v560_v59 = vpop.xlane.xlu1 %559 }
 0x299   : > { %v561_v60 = vrot.slane %v560_v59, 4 }
 0x29b   : > { %v562_v61 = vadd.f32 %v561_v60, %v560_v59 }
 0x29d   : > { %v563_v62 = vrot.slane %v562_v61, 2 }
 0x29f   : > { %v564_v63 = vadd.f32 %v563_v62, %v562_v61 }
 0x2a1   : > { %v565_v0 = vrot.slane %v564_v63, 1 }
 0x2a3   : > { %v566_v1 = vadd.f32 %v565_v0, %v564_v63 }
 0x2a5   : > { %791 = vpush %v566_v1 }
 0x2d6   : > { %s792_s22 = spop %791 }
 0x2d7   : > { %v568_v2 = vstv %s792_s22 }
 0x2d8   : > { %569 = vst [vmem:[%s256_s21] sm:$0x1] %v568_v2 }
 0x2d9 PF: > { %s14_s17 = sadd.s32 1, %s848_s17   ;;  %s1045_s15 = smov %s844_s16 }
 0x2da   : > { %p11_p5 = scmp.ge.s32.totalorder %s14_s17, 4   ;;  %s1046_s16 = smov %s1048_s18 }
 0x2dc   :  { %13 = sbr.rel (!%p11_p5) target bundleno = 2 (0x2), region = 69 }

</bundles_post_ra>
